<compile_context>
chip_gen: v5e
topology: v5e:2x2
jax: 0.10.0
libtpu: 0.0.40
codegen_flags: <defaults>
</compile_context>

<pallas_src>
import functools

import jax
import jax.numpy as jnp
from jax import lax
from jax.experimental import pallas as pl
from jax.experimental.pallas import tpu as pltpu

LANES = 128
SUBLANE_ALIGN = 32            # legal sublane tiling for 32/16/8-bit dtypes
TARGET_TILE_BYTES = 2 << 20   # ~2 MiB (f32) per stream per pipeline buffer
MIN_SPLIT_ROWS = 256          # force grid >= 2 above this (v7x megacore)
VMEM_LIMIT_BYTES = 40 * 1024 * 1024


def _cdiv(a, b):
    return -(-a // b)


def _round_up(a, b):
    return _cdiv(a, b) * b


# --------------------------------------------------------------------------
# layout / tiling helpers (all static Python, no device work)
# --------------------------------------------------------------------------
def _fold_shape(shape, n):
    """Pick a free (bitcast-only) 2-D view (rows, cols) of the flat tensor.

    If numel is a multiple of 128 we use a lane-dense (n/128, 128) slab.
    Otherwise trailing dims are folded into the lane axis until it reaches
    128 (or dims run out); no padding is needed because the BlockSpec's last
    dim then equals the full array dim.
    """
    if n % LANES == 0:
        return n // LANES, LANES
    cols = 1
    for d in reversed(shape):
        cols *= int(d)
        if cols >= LANES:
            break
    cols = max(cols, 1)
    return n // cols, cols


def _choose_tiling(rows, cols):
    """Row-block size and grid length for a (rows, cols) slab."""
    cols_pad = _round_up(cols, LANES)
    max_rows = max(SUBLANE_ALIGN,
                   (TARGET_TILE_BYTES // (4 * cols_pad))
                   // SUBLANE_ALIGN * SUBLANE_ALIGN)
    grid_n = _cdiv(rows, max_rows)
    # Make sure the "parallel" grid axis has >= 2 steps for medium tensors so
    # it can shard across v7x's two TensorCores (no-op on single-TC chips).
    if grid_n < 2 and rows >= MIN_SPLIT_ROWS:
        grid_n = 2
    if grid_n <= 1:
        return rows, 1                       # single full-array block
    block_r = _round_up(_cdiv(rows, grid_n), SUBLANE_ALIGN)
    grid_n = _cdiv(rows, block_r)
    return block_r, grid_n
    # Note: a huge ragged 1-D tensor (rows == 1, cols == numel) would put the
    # whole tensor in one VMEM block; such shapes would need a lane-axis grid.


# --------------------------------------------------------------------------
# kernels
# --------------------------------------------------------------------------
def _loss_block(x, inf, tgt, lmbd):
    x = x.astype(jnp.float32)
    inf = inf.astype(jnp.float32)
    tgt = tgt.astype(jnp.float32)
    # Numerically stable logsigmoid(x) = min(x, 0) - log1p(exp(-|x|))
    logp = jnp.minimum(x, 0.0) - jnp.log1p(jnp.exp(-jnp.abs(x)))
    a = (1.0 - lmbd) * inf
    c1 = -(1.0 - a) * tgt                  # coefficient of logp
    c2 = -(lmbd + a) * (1.0 - tgt)         # coefficient of lognp = logp - x
    return (c1 + c2) * logp - c2 * x


def _unpack(refs, wmode):
    x_ref, inf_ref, tgt_ref = refs[0], refs[1], refs[2]
    if wmode in ('smem', 'stream'):
        return x_ref, inf_ref, tgt_ref, refs[3], refs[4]
    return x_ref, inf_ref, tgt_ref, None, refs[3]


def _apply_weight(loss, w_ref, wmode, wconst):
    if wmode == 'const':
        return loss * wconst
    if wmode == 'smem':
        return loss * w_ref[0, 0].astype(jnp.float32)
    if wmode == 'stream':
        return loss * w_ref[...].astype(jnp.float32)
    return loss


def _elementwise_kernel(*refs, lmbd, wmode, wconst):
    x_ref, inf_ref, tgt_ref, w_ref, out_ref = _unpack(refs, wmode)
    loss = _loss_block(x_ref[...], inf_ref[...], tgt_ref[...], lmbd)
    loss = _apply_weight(loss, w_ref, wmode, wconst)
    # NOTE: on a partial last row-block the rows past the array end are
    # computed from undefined VMEM (possibly NaN/Inf).  This is safe only
    # because the op is purely elementwise and Pallas discards out-of-bounds
    # rows on writeback -- do not add cross-row ops here without a mask.
    out_ref[...] = loss.astype(out_ref.dtype)


def _partial_sum_kernel(*refs, lmbd, wmode, wconst, valid_last_rows, block_r):
    x_ref, inf_ref, tgt_ref, w_ref, out_ref = _unpack(refs, wmode)
    loss = _loss_block(x_ref[...], inf_ref[...], tgt_ref[...], lmbd)
    loss = _apply_weight(loss, w_ref, wmode, wconst)

    if valid_last_rows == block_r:
        # Row axis divides exactly: unmasked fast path on every tile.
        out_ref[...] = jnp.sum(loss, axis=0, keepdims=True)
    else:
        last = pl.num_programs(0) - 1

        @pl.when(pl.program_id(0) != last)
        def _():
            out_ref[...] = jnp.sum(loss, axis=0, keepdims=True)

        @pl.when(pl.program_id(0) == last)
        def _():
            # Only the final tile pays for the row mask (sublane compare only;
            # the lane axis is always fully valid by construction).
            row = lax.broadcasted_iota(jnp.int32, loss.shape, 0)
            masked = jnp.where(row < valid_last_rows, loss, 0.0)
            out_ref[...] = jnp.sum(masked, axis=0, keepdims=True)


# --------------------------------------------------------------------------
# wrapper
# --------------------------------------------------------------------------
def _prepare_weight(weight, orig_shape, rows, cols):
    """Return (wmode, wconst, extra_operand)."""
    if weight is None:
        return 'none', 1.0, None
    if isinstance(weight, (int, float)):
        return 'const', float(weight), None
    w = jnp.asarray(weight)
    if w.size == 1:
        # Scalar weight: pass it through SMEM, do not stream a full tensor.
        return 'smem', 1.0, w.reshape(1, 1).astype(jnp.float32)
    # Full (or broadcastable) weight tensor: stream it.  broadcast_to is a
    # no-op when the shape already matches; only truly-broadcast non-scalar
    # weights pay a materialization here.
    w_full = jnp.broadcast_to(w, orig_shape).reshape(rows, cols)
    return 'stream', 1.0, w_full


def bce_with_logits_im_loss(inp, inference, target, weight=None, *,
                            lmbd, reduction='mean'):
    if reduction not in ('none', 'mean', 'sum'):
        raise ValueError('Unknown reduction method "{}"'.format(reduction))

    orig_shape = inp.shape
    n = int(inp.size)
    rows, cols = _fold_shape(orig_shape, n)
    block_r, grid_n = _choose_tiling(rows, cols)
    valid_last_rows = rows - (grid_n - 1) * block_r

    # Bitcast-only reshapes: no host-side padding / slicing copies.
    operands = [
        jnp.reshape(inp, (rows, cols)),
        jnp.reshape(inference, (rows, cols)),
        jnp.reshape(target, (rows, cols)),
    ]

    tile = pl.BlockSpec((block_r, cols), lambda i: (i, 0))
    in_specs = [tile, tile, tile]

    wmode, wconst, w_operand = _prepare_weight(weight, orig_shape, rows, cols)
    if wmode == 'smem':
        operands.append(w_operand)
        in_specs.append(pl.BlockSpec(memory_space=pltpu.MemorySpace.SMEM))
    elif wmode == 'stream':
        operands.append(w_operand)
        in_specs.append(tile)

    in_bytes = sum(int(op.size) * op.dtype.itemsize for op in operands)
    params = pltpu.CompilerParams(dimension_semantics=("parallel",),
                                  vmem_limit_bytes=VMEM_LIMIT_BYTES)

    if reduction == 'none':
        out_dtype = (inp.dtype if jnp.issubdtype(inp.dtype, jnp.floating)
                     else jnp.float32)
        out_bytes = n * jnp.dtype(out_dtype).itemsize
        out = pl.pallas_call(
            functools.partial(_elementwise_kernel, lmbd=float(lmbd),
                              wmode=wmode, wconst=wconst),
            out_shape=jax.ShapeDtypeStruct((rows, cols), out_dtype),
            grid_spec=pltpu.PrefetchScalarGridSpec(
                num_scalar_prefetch=0,
                grid=(grid_n,),
                in_specs=in_specs,
                out_specs=tile,
            ),
            compiler_params=params,
            cost_estimate=pl.CostEstimate(
                flops=15 * n, transcendentals=2 * n,
                bytes_accessed=in_bytes + out_bytes),
        )(*operands)
        return out.reshape(orig_shape)

    partial = pl.pallas_call(
        functools.partial(_partial_sum_kernel, lmbd=float(lmbd),
                          wmode=wmode, wconst=wconst,
                          valid_last_rows=valid_last_rows, block_r=block_r),
        out_shape=jax.ShapeDtypeStruct((grid_n, cols), jnp.float32),
        grid_spec=pltpu.PrefetchScalarGridSpec(
            num_scalar_prefetch=0,
            grid=(grid_n,),
            in_specs=in_specs,
            out_specs=pl.BlockSpec((1, cols), lambda i: (i, 0)),
        ),
        compiler_params=params,
        cost_estimate=pl.CostEstimate(
            flops=16 * n, transcendentals=2 * n,
            bytes_accessed=in_bytes + grid_n * cols * 4),
    )(*operands)

    total = jnp.sum(partial)   # tiny (grid, cols) epilogue
    if reduction == 'mean':
        return total / n
    # NOTE: the PyTorch module returns `loss.sum` (the bound method) for
    # reduction='sum'; we return the actual sum, the clearly intended value.
    return total


# --------------------------------------------------------------------------
# pure-JAX reference + self-test
# --------------------------------------------------------------------------
def _reference(inp, inference, target, weight, lmbd, reduction):
    x = inp.astype(jnp.float32)
    inf = inference.astype(jnp.float32)
    tgt = target.astype(jnp.float32)
    logp = jax.nn.log_sigmoid(x)
    lognp = logp - x
    loss = -(1.0 - (1.0 - lmbd) * inf) * tgt * logp
    loss = loss + (-(lmbd + (1.0 - lmbd) * inf) * (1.0 - tgt) * lognp)
    if weight is not None:
        loss = loss * jnp.asarray(weight, jnp.float32)
    if reduction == 'none':
        return loss
    if reduction == 'mean':
        return loss.mean()
    return loss.sum()


if __name__ == "__main__":
    key = jax.random.PRNGKey(0)
    ks = jax.random.split(key, 8)
    lmbd = 0.5

    # --- small NCHW case (lane-aligned, single tile, weight=None) ----------
    shape = (2, 4, 16, 16)
    inp = jax.random.normal(ks[0], shape, dtype=jnp.float32) * 2.0
    inference = jax.random.bernoulli(ks[1], 0.3, shape).astype(jnp.float32)
    target = jax.random.bernoulli(ks[2], 0.5, shape).astype(jnp.int32)

    got = jax.block_until_ready(bce_with_logits_im_loss(
        inp, inference, target, None, lmbd=lmbd, reduction='mean'))
    ref = _reference(inp, inference, target, None, lmbd, 'mean')
    assert jnp.allclose(got, ref, rtol=1e-5, atol=1e-6), (got, ref)

    got = jax.block_until_ready(bce_with_logits_im_loss(
        inp, inference, target, None, lmbd=lmbd, reduction='none'))
    ref = _reference(inp, inference, target, None, lmbd, 'none')
    assert jnp.allclose(got, ref, rtol=1e-5, atol=1e-6)

    # full weight tensor (streamed 4th input) + 'sum'
    weight = jax.random.uniform(ks[3], shape, dtype=jnp.float32)
    got = jax.block_until_ready(bce_with_logits_im_loss(
        inp, inference, target, weight, lmbd=lmbd, reduction='sum'))
    ref = _reference(inp, inference, target, weight, lmbd, 'sum')
    assert jnp.allclose(got, ref, rtol=1e-5, atol=1e-4), (got, ref)

    # scalar weight via SMEM (no full-size weight HBM stream)
    wscalar = jnp.asarray(0.7, dtype=jnp.float32)
    got = jax.block_until_ready(bce_with_logits_im_loss(
        inp, inference, target, wscalar, lmbd=lmbd, reduction='mean'))
    ref = _reference(inp, inference, target, wscalar, lmbd, 'mean')
    assert jnp.allclose(got, ref, rtol=1e-5, atol=1e-6), (got, ref)

    # python-scalar weight folded into the kernel as a constant
    got = jax.block_until_ready(bce_with_logits_im_loss(
        inp, inference, target, 2.0, lmbd=lmbd, reduction='mean'))
    ref = _reference(inp, inference, target, 2.0, lmbd, 'mean')
    assert jnp.allclose(got, ref, rtol=1e-5, atol=1e-6), (got, ref)

    # --- tiny ragged case (numel % 128 != 0 -> trailing dims folded) --------
    shape2 = (3, 5, 7)
    inp2 = jax.random.normal(ks[4], shape2, dtype=jnp.float32)
    inference2 = jax.random.bernoulli(ks[5], 0.3, shape2).astype(jnp.float32)
    target2 = jax.random.bernoulli(ks[6], 0.5, shape2).astype(jnp.float32)

    got = jax.block_until_ready(bce_with_logits_im_loss(
        inp2, inference2, target2, None, lmbd=0.3, reduction='mean'))
    ref = _reference(inp2, inference2, target2, None, 0.3, 'mean')
    assert jnp.allclose(got, ref, rtol=1e-5, atol=1e-6), (got, ref)

    got = jax.block_until_ready(bce_with_logits_im_loss(
        inp2, inference2, target2, None, lmbd=0.3, reduction='none'))
    ref = _reference(inp2, inference2, target2, None, 0.3, 'none')
    assert jnp.allclose(got, ref, rtol=1e-5, atol=1e-6)

    # --- multi-tile ragged case (grid=2, partial + masked last row block) ---
    shape3 = (300, 900)
    kk = jax.random.split(jax.random.PRNGKey(1), 3)
    inp3 = jax.random.normal(kk[0], shape3, dtype=jnp.float32)
    inference3 = jax.random.bernoulli(kk[1], 0.3, shape3).astype(jnp.float32)
    target3 = jax.random.bernoulli(kk[2], 0.5, shape3).astype(jnp.float32)

    got = jax.block_until_ready(bce_with_logits_im_loss(
        inp3, inference3, target3, None, lmbd=0.7, reduction='mean'))
    ref = _reference(inp3, inference3, target3, None, 0.7, 'mean')
    assert jnp.allclose(got, ref, rtol=1e-4, atol=1e-6), (got, ref)

    got = jax.block_until_ready(bce_with_logits_im_loss(
        inp3, inference3, target3, None, lmbd=0.7, reduction='none'))
    ref = _reference(inp3, inference3, target3, None, 0.7, 'none')
    assert jnp.allclose(got, ref, rtol=1e-4, atol=1e-5)

    # --- larger lane-aligned case (grid=2, unmasked fast path) --------------
    shape4 = (1024, 1024)
    kk2 = jax.random.split(jax.random.PRNGKey(2), 3)
    inp4 = jax.random.normal(kk2[0], shape4, dtype=jnp.float32)
    inference4 = jax.random.bernoulli(kk2[1], 0.3, shape4).astype(jnp.float32)
    target4 = jax.random.bernoulli(kk2[2], 0.5, shape4).astype(jnp.float32)

    got = jax.block_until_ready(bce_with_logits_im_loss(
        inp4, inference4, target4, None, lmbd=0.4, reduction='mean'))
    ref = _reference(inp4, inference4, target4, None, 0.4, 'mean')
    assert jnp.allclose(got, ref, rtol=1e-4, atol=1e-6), (got, ref)

    print("KERNEL_OK")
</pallas_src>

<mosaic_0001>
module attributes {stable_mosaic.version = 11 : i64} {
  func.func @_partial_sum_kernel(%arg0: i32, %arg1: memref<16x128xf32, #tpu.memory_space<vmem>>, %arg2: memref<16x128xf32, #tpu.memory_space<vmem>>, %arg3: memref<16x128xi32, #tpu.memory_space<vmem>>, %arg4: memref<1x128xf32, #tpu.memory_space<vmem>>) attributes {dimension_semantics = [#tpu.dimension_semantics<parallel>], iteration_bounds = array<i64: 1>, scalar_prefetch = 0 : i64, scratch_operands = 0 : i64, tpu.core_type = #tpu.core_type<tc>, window_params = [{transform_indices = @transform_0, window_bounds = array<i64: 16, 128>}, {transform_indices = @transform_1, window_bounds = array<i64: 16, 128>}, {transform_indices = @transform_2, window_bounds = array<i64: 16, 128>}, {transform_indices = @transform_3, window_bounds = array<i64: 1, 128>}]} {
    %c0 = arith.constant 0 : index
    %c0_0 = arith.constant 0 : index
    %0 = vector.load %arg1[%c0, %c0_0] : memref<16x128xf32, #tpu.memory_space<vmem>>, vector<16x128xf32>
    %c0_1 = arith.constant 0 : index
    %c0_2 = arith.constant 0 : index
    %1 = vector.load %arg2[%c0_1, %c0_2] : memref<16x128xf32, #tpu.memory_space<vmem>>, vector<16x128xf32>
    %c0_3 = arith.constant 0 : index
    %c0_4 = arith.constant 0 : index
    %2 = vector.load %arg3[%c0_3, %c0_4] : memref<16x128xi32, #tpu.memory_space<vmem>>, vector<16x128xi32>
    %3 = arith.sitofp %2 : vector<16x128xi32> to vector<16x128xf32>
    %cst = arith.constant 0.000000e+00 : f32
    %4 = vector.broadcast %cst : f32 to vector<16x128xf32>
    %5 = arith.minimumf %0, %4 : vector<16x128xf32>
    %6 = math.absf %0 : vector<16x128xf32>
    %cst_5 = arith.constant 0.000000e+00 : f32
    %7 = vector.broadcast %cst_5 : f32 to vector<16x128xf32>
    %8 = arith.subf %7, %6 : vector<16x128xf32>
    %9 = math.exp %8 : vector<16x128xf32>
    %10 = math.log1p %9 : vector<16x128xf32>
    %11 = arith.subf %5, %10 : vector<16x128xf32>
    %cst_6 = arith.constant 5.000000e-01 : f32
    %12 = vector.broadcast %cst_6 : f32 to vector<16x128xf32>
    %13 = arith.mulf %12, %1 : vector<16x128xf32>
    %cst_7 = arith.constant 1.000000e+00 : f32
    %14 = vector.broadcast %cst_7 : f32 to vector<16x128xf32>
    %15 = arith.subf %14, %13 : vector<16x128xf32>
    %cst_8 = arith.constant 0.000000e+00 : f32
    %16 = vector.broadcast %cst_8 : f32 to vector<16x128xf32>
    %17 = arith.subf %16, %15 : vector<16x128xf32>
    %18 = arith.mulf %17, %3 : vector<16x128xf32>
    %cst_9 = arith.constant 5.000000e-01 : f32
    %19 = vector.broadcast %cst_9 : f32 to vector<16x128xf32>
    %20 = arith.addf %19, %13 : vector<16x128xf32>
    %cst_10 = arith.constant 0.000000e+00 : f32
    %21 = vector.broadcast %cst_10 : f32 to vector<16x128xf32>
    %22 = arith.subf %21, %20 : vector<16x128xf32>
    %cst_11 = arith.constant 1.000000e+00 : f32
    %23 = vector.broadcast %cst_11 : f32 to vector<16x128xf32>
    %24 = arith.subf %23, %3 : vector<16x128xf32>
    %25 = arith.mulf %22, %24 : vector<16x128xf32>
    %26 = arith.addf %18, %25 : vector<16x128xf32>
    %27 = arith.mulf %26, %11 : vector<16x128xf32>
    %28 = arith.mulf %25, %0 : vector<16x128xf32>
    %29 = arith.subf %27, %28 : vector<16x128xf32>
    %cst_12 = arith.constant dense<0.000000e+00> : vector<128xf32>
    %30 = vector.multi_reduction <add>, %29, %cst_12 [0] : vector<16x128xf32> to vector<128xf32>
    %31 = vector.shape_cast %30 : vector<128xf32> to vector<1x128xf32>
    %c0_13 = arith.constant 0 : index
    %c0_14 = arith.constant 0 : index
    %32 = vector.load %arg4[%c0_13, %c0_14] : memref<1x128xf32, #tpu.memory_space<vmem>>, vector<1x128xf32>
    tpu.vector_store %arg4[%c0_13, %c0_14], %31 {strides = array<i32>} : memref<1x128xf32, #tpu.memory_space<vmem>>, vector<1x128xf32>,
    return
  }
  func.func @transform_0(%arg0: i32) -> (i32, i32) {
    %c0_i32 = arith.constant 0 : i32
    %c0_i32_0 = arith.constant 0 : i32
    return %arg0, %c0_i32 : i32, i32
  }
  func.func @transform_1(%arg0: i32) -> (i32, i32) {
    %c0_i32 = arith.constant 0 : i32
    %c0_i32_0 = arith.constant 0 : i32
    return %arg0, %c0_i32 : i32, i32
  }
  func.func @transform_2(%arg0: i32) -> (i32, i32) {
    %c0_i32 = arith.constant 0 : i32
    %c0_i32_0 = arith.constant 0 : i32
    return %arg0, %c0_i32 : i32, i32
  }
  func.func @transform_3(%arg0: i32) -> (i32, i32) {
    %c0_i32 = arith.constant 0 : i32
    %c0_i32_0 = arith.constant 0 : i32
    return %arg0, %c0_i32 : i32, i32
  }
}

</mosaic_0001>

<bundles_post_ra>
// kernel: tpu_custom_call.1
= control target key start
LH: loop header
LB: loop body
LE: loop exit
PB: predicated region body
PF: predicated region fallthrough
CT: control target
= control target key end

     0   :  { %8 = vsyncpa [#allocation3], 0  ;;  %s304_s0 = inlined_call_operand.hbm [shape: f32[16,128], index: 0, kind: input, shape index: {}]   ;;  %s305_s1 = inlined_call_operand.hbm [shape: f32[16,128], index: 1, kind: input, shape index: {}]   ;;  %s306_s2 = inlined_call_operand.hbm [shape: s32[16,128], index: 2, kind: input, shape index: {}]   ;;  %s307_s3 = inlined_call_operand.hbm [shape: f32[1,128], index: 3, kind: output, shape index: {}]  }
   0x1   :  { %9 = vsyncpa [#allocation6], 0 }
   0x2   :  { %10 = vsyncpa [#allocation4], 0  ;;  %s28_s14 = sshll.u32 %s305_s1, 4  ;;  %s266_s15 = smov [#allocation5]   ;;  %s29_s14 = int_to_ptr.hbm [resolvable:$true] %s28_s14 }
   0x3   :  { %s30_s16 = sshll.u32 %s266_s15, 4  ;;  %s15_s19 = sshll.u32 %s304_s0, 4  ;;  %s31_s16 = int_to_ptr.vmem [resolvable:$true] %s30_s16  ;;  %s16_s19 = int_to_ptr.hbm [resolvable:$true] %s15_s19 }
   0x4   :  { %s267_s20 = smov 128   ;;  %s268_s21 = smov 8  }
   0x5   :  { %36 = dma.hbm_to_vmem [thread:$0]  %s29_s14, 256, %s31_s16, [#allocation6], %s267_s20, %s267_s20, %s268_s21  }
   0x6   :  { %s269_s22 = smov [#allocation2]   ;;  %s41_s26 = sshll.u32 %s306_s2, 4  ;;  %s42_s26 = int_to_ptr.hbm [resolvable:$true] %s41_s26 }
   0x7   :  { %s17_s23 = sshll.u32 %s269_s22, 4  ;;  %s270_s1 = smov [#allocation7]   ;;  %s18_s23 = int_to_ptr.vmem [resolvable:$true] %s17_s23 }
   0x8   :  { %23 = dma.hbm_to_vmem [thread:$0]  %s16_s19, 256, %s18_s23, [#allocation3], %s267_s20, %s267_s20, %s268_s21  }
   0x9   :  { %s43_s27 = sshll.u32 %s270_s1, 4  ;;  %s44_s27 = int_to_ptr.vmem [resolvable:$true] %s43_s27 }
   0xa   :  { %49 = dma.hbm_to_vmem [thread:$0]  %s42_s26, 256, %s44_s27, [#allocation6], %s267_s20, %s267_s20, %s268_s21  }
   0xb   :  { %260 = dma.done.wait [#allocation3], 256  }
   0xc   :  { %261 = vsyncadd [#allocation3], 4294967040 }
   0xd   :  { %262 = dma.done.wait [#allocation6], 512  }
   0xe   :  { %263 = vsyncadd [#allocation6], 4294966784  ;;  %v62_v0 = vld [vmem:[#allocation2] sm:$0xff]  ;;  %v63_v1 = vld [vmem:[#allocation2 + $0x8] sm:$0xff]  ;;  %s271_s0 = smov [#allocation8]   ;;  %s139_s30 = sshll.u32 %s307_s3, 4  ;;  %s140_s30 = int_to_ptr.hbm [resolvable:$true] %s139_s30 }
   0xf   :  { %v72_v2 = vand.u32 2147483647, %v62_v0  ;;  %v73_v3 = vand.u32 2147483647, %v63_v1  ;;  %v64_v6 = vld [vmem:[#allocation5] sm:$0xff]  ;;  %v65_v9 = vld [vmem:[#allocation5 + $0x8] sm:$0xff] }
  0x10   :  { %v66_v10 = vld [vmem:[#allocation7] sm:$0xff]  ;;  %v100_v11 = vmul.f32 0.5, %v64_v6  ;;  %v67_v12 = vld [vmem:[#allocation7 + $0x8] sm:$0xff]  ;;  %v101_v13 = vmul.f32 0.5, %v65_v9  ;;  %v70_v42 = vmin.f32 %v62_v0, 0.0  ;;  %v71_v45 = vmin.f32 %v63_v1, 0.0 }
  0x11   :  { %v74_v4 = vsub.f32 0.0, %v72_v2  ;;  %v75_v5 = vsub.f32 0.0, %v73_v3  ;;  %v68_v14 = vcvt.s32.f32 %v66_v10  ;;  %v69_v15 = vcvt.s32.f32 %v67_v12  ;;  %s137_s2 = sshll.u32 %s271_s0, 4  ;;  %s138_s2 = int_to_ptr.vmem [resolvable:$true] %s137_s2 }
  0x12   :  { %v102_v16 = vsub.f32 1.0, %v100_v11  ;;  %v108_v17 = vadd.f32 0.5, %v100_v11  ;;  %v103_v19 = vsub.f32 1.0, %v101_v13  ;;  %v109_v20 = vadd.f32 0.5, %v101_v13 }
  0x13   :  { %v76_v7 = vmul.f32 1.442695, %v74_v4  ;;  %v78_v8 = vmul.f32 1.442695, %v75_v5  ;;  %v112_v26 = vsub.f32 1.0, %v68_v14  ;;  %v113_v29 = vsub.f32 1.0, %v69_v15 }
  0x14   :  { %v104_v27 = vsub.f32 0.0, %v102_v16  ;;  %v110_v28 = vsub.f32 0.0, %v108_v17  ;;  %v105_v31 = vsub.f32 0.0, %v103_v19  ;;  %v111_v32 = vsub.f32 0.0, %v109_v20 }
  0x15   :  { %156 = vpow2.f32 %v76_v7 }
  0x16   :  { %158 = vpow2.f32 %v78_v8  ;;  %v106_v36 = vmul.f32 %v104_v27, %v68_v14  ;;  %v114_v37 = vmul.f32 %v112_v26, %v110_v28  ;;  %v107_v39 = vmul.f32 %v105_v31, %v69_v15 }
  0x17   :  { %v115_v40 = vmul.f32 %v113_v29, %v111_v32 }
  0x18   :  { %v116_v48 = vadd.f32 %v114_v37, %v106_v36  ;;  %v120_v53 = vmul.f32 %v114_v37, %v62_v0 }
  0x19   :  { %v117_v50 = vadd.f32 %v115_v40, %v107_v39  ;;  %v121_v55 = vmul.f32 %v115_v40, %v63_v1 }
  0x1b   :  { %v157_v18 = vpop.eup %156 }
  0x1c   :  { %v159_v21 = vpop.eup %158  ;;  %v80_v22 = vadd.f32 1.0, %v157_v18  ;;  %v83_v23 = vmul.f32 -0.5, %v157_v18  ;;  %v86_v33 = vand.u32 2147483647, %v157_v18 }
  0x1d   :  { %v89_v24 = vadd.f32 1.0, %v159_v21  ;;  %v92_v25 = vmul.f32 -0.5, %v159_v21  ;;  %v95_v35 = vand.u32 2147483647, %v159_v21 }
  0x1e   :  { %160 = vlog2.f32 %v80_v22  ;;  %v84_v30 = vadd.f32 1.0, %v83_v23  ;;  %vm87_vm0 = vcmp.lt.f32.partialorder %v86_v33, 0.0004427343 }
  0x1f   :  { %162 = vlog2.f32 %v89_v24  ;;  %v93_v34 = vadd.f32 1.0, %v92_v25  ;;  %vm96_vm1 = vcmp.lt.f32.partialorder %v95_v35, 0.0004427343 }
  0x20   :  { %v85_v38 = vmul.f32 %v157_v18, %v84_v30 }
  0x21   :  { %v94_v43 = vmul.f32 %v159_v21, %v93_v34 }
  0x24   :  { %v161_v41 = vpop.eup %160 }
  0x25   :  { %v163_v44 = vpop.eup %162  ;;  %v82_v46 = vmul.f32 0.6931472, %v161_v41 }
  0x26   :  { %v91_v47 = vmul.f32 0.6931472, %v163_v44 }
  0x27   :  { %v88_v49 = vsel %vm87_vm0, %v85_v38, %v82_v46 }
  0x28   :  { %v97_v51 = vsel %vm96_vm1, %v94_v43, %v91_v47  ;;  %v98_v52 = vsub.f32 %v70_v42, %v88_v49 }
  0x29   :  { %v99_v54 = vsub.f32 %v71_v45, %v97_v51 }
  0x2a   :  { %v118_v56 = vmul.f32 %v116_v48, %v98_v52 }
  0x2b   :  { %v119_v57 = vmul.f32 %v117_v50, %v99_v54 }
  0x2c   :  { %v122_v58 = vsub.f32 %v118_v56, %v120_v53 }
  0x2d   :  { %v123_v59 = vsub.f32 %v119_v57, %v121_v55 }
  0x2f   :  { %v124_v60 = vadd.f32 %v123_v59, %v122_v58 }
  0x31   :  { %v125_v61 = vrot.slane %v124_v60, 4 }
  0x33   :  { %v126_v62 = vadd.f32 %v125_v61, %v124_v60 }
  0x35   :  { %v127_v63 = vrot.slane %v126_v62, 2 }
  0x37   :  { %v128_v2 = vadd.f32 %v127_v63, %v126_v62 }
  0x39   :  { %v129_v3 = vrot.slane %v128_v2, 1 }
  0x3b   :  { %v130_v4 = vadd.f32 %v129_v3, %v128_v2 }
  0x3d   :  { %131 = vst [vmem:[#allocation8] sm:$0x1] %v130_v4 }
  0x3e   :  { %142 = dma.vmem_to_hbm [thread:$0]  %s138_s2, 16, %s140_s30, [#allocation4]  }
  0x3f   :  { %264 = dma.done.wait [#allocation4], 16  }
  0x40   :  { %265 = vsyncadd [#allocation4], 4294967280 }
  0x41   :  { %147 = vsyncpa [#allocation3], 1 }
  0x42   :  { %148 = vsyncpa [#allocation6], 1 }
  0x43   :  { %149 = vsyncpa [#allocation4], 1 }

</bundles_post_ra>
